<compile_context>
chip_gen: v6e
topology: v6e:2x2x1
jax: 0.10.0
libtpu: 0.0.40
codegen_flags: <defaults>
</compile_context>

<pallas_src>
import math

import jax
import jax.numpy as jnp
from jax.experimental import pallas as pl
from jax.experimental.pallas import tpu as pltpu


def _round_up(x, m):
    return ((x + m - 1) // m) * m


# MXU input dtype on every TPU generation (f32 accumulation in the kernel).
_COMPUTE_DTYPE = jnp.bfloat16


def _vmem_budget_bytes():
    """Generation-aware VMEM ceiling: ~48 MiB on v7x (64 MiB physical),
    ~96 MiB on v5e/v6e (128 MiB physical)."""
    try:
        cap = pltpu.get_tpu_info().vmem_capacity_bytes
    except Exception:
        cap = 64 << 20  # conservative fallback (v7x per-core VMEM)
    return int(min(max(cap * 3 // 4, 32 << 20), 100 << 20))


# ----------------------------------------------------------------------------
# Pallas kernel: fused linear projection  y = x @ W + b   (f32 accumulate)
# ----------------------------------------------------------------------------
def _linear_kernel(x_ref, w_ref, b_ref, o_ref):
    # Cast the streamed f32 x tile to the MXU input dtype in-kernel
    # (avoids a wrapper-side HBM round trip for the cast).
    x = x_ref[...].astype(w_ref.dtype)
    acc = jnp.dot(x, w_ref[...], preferred_element_type=jnp.float32)
    o_ref[...] = (acc + b_ref[...]).astype(o_ref.dtype)


def pallas_linear(x, w, b, n_out):
    """x: (M, K) f32;  w: (K, Np) pre-cast bf16 (Np = lane-padded out width);
    b: (1, Np) f32.  Returns (M, n_out) in x.dtype.

    W / bias are resident in VMEM for the whole grid (constant block index,
    single buffer); only the x row tiles and output tiles are streamed.
    """
    M, K = x.shape
    Np = w.shape[1]
    out_dtype = x.dtype
    out_isz = jnp.dtype(out_dtype).itemsize
    w_bytes = w.size * w.dtype.itemsize
    b_bytes = b.size * 4

    budget = _vmem_budget_bytes()
    slack = 8 << 20  # Mosaic internal scratch / alignment headroom
    Mr = _round_up(M, 8)

    # Largest row tile that fits: 2x(tm,K) f32 x tiles + resident W/b +
    # 2x(tm,Np) output tiles.  (Per-grid-step overhead amortizes at >=512.)
    tm = 8
    for cand in (1024, 512, 256, 128, 64, 32, 16, 8):
        if cand > Mr:
            continue
        need = 2 * cand * K * 4 + w_bytes + b_bytes + 2 * cand * Np * out_isz
        if need + slack <= budget:
            tm = cand
            break
    # v7x has two TensorCores: give the parallel M axis >= 2 blocks when possible.
    if pl.cdiv(M, tm) < 2 and Mr >= 16:
        tm = _round_up(-(-M // 2), 8)

    grid = (pl.cdiv(M, tm),)
    # TODO(synk): for very large d_model add a K ("arbitrary") grid axis with a
    # VMEM f32 accumulator + pl.when init/finalize; a resident (K, Np) W plus
    # (tm, K) tiles will eventually exceed the 64 MiB v7x VMEM.

    cost = pl.CostEstimate(
        flops=2 * M * K * Np,
        transcendentals=0,
        bytes_accessed=M * K * 4 + w_bytes + b_bytes + M * Np * out_isz,
    )
    cparams = pltpu.CompilerParams(
        dimension_semantics=("parallel",),
        vmem_limit_bytes=budget,
    )

    def build(single_buffer_weights):
        wkw = {"pipeline_mode": pl.Buffered(1)} if single_buffer_weights else {}
        in_specs = [
            pl.BlockSpec((tm, K), lambda i: (i, 0)),
            # constant block index -> fetched once, resident across the grid
            pl.BlockSpec((K, Np), lambda i: (0, 0), **wkw),
            pl.BlockSpec((1, Np), lambda i: (0, 0), **wkw),
        ]
        return pl.pallas_call(
            _linear_kernel,
            out_shape=jax.ShapeDtypeStruct((M, Np), out_dtype),
            grid=grid,
            in_specs=in_specs,
            out_specs=pl.BlockSpec((tm, Np), lambda i: (i, 0)),
            compiler_params=cparams,
            cost_estimate=cost,
        )

    try:
        out = build(True)(x, w, b)
    except Exception:
        # Fallback if pipeline_mode=pl.Buffered(1) is unsupported on this
        # jax/Mosaic build; W is still only DMA'd once (constant block index).
        out = build(False)(x, w, b)

    if Np != n_out:
        out = out[:, :n_out]
    return out


# ----------------------------------------------------------------------------
# inner_correlation: Autoformer AutoCorrelation (inference-style aggregation)
# JAX glue — FFT + data-dependent top-k have no Pallas equivalent; the delay
# aggregation is a small permutation matmul (no gather / big broadcast).
# ----------------------------------------------------------------------------
def auto_correlation(q, k, v, factor=1):
    # q: (B, L, H, E), k/v: (B, S, H, E)  ->  (B, L, H, E)
    B, L, H, E = q.shape
    S = k.shape[1]
    if L > S:
        pad = jnp.zeros((B, L - S, H, E), q.dtype)
        v = jnp.concatenate([v, pad], axis=1)
        k = jnp.concatenate([k, pad], axis=1)
    else:
        v = v[:, :L]
        k = k[:, :L]

    # Period-based dependencies via FFT cross-correlation.
    q_t = jnp.transpose(q, (0, 2, 3, 1))  # (B, H, E, L)
    k_t = jnp.transpose(k, (0, 2, 3, 1))
    v_t = jnp.transpose(v, (0, 2, 3, 1))
    q_fft = jnp.fft.rfft(q_t, axis=-1)
    k_fft = jnp.fft.rfft(k_t, axis=-1)
    res = q_fft * jnp.conj(k_fft)                                # (B, H, E, Lf)

    # Head/channel mean taken in the frequency domain (irfft is linear):
    # only a (B, L) inverse FFT instead of (B, H, E, L).
    mean_value = jnp.fft.irfft(res.mean(axis=(1, 2)), n=L, axis=-1)  # (B, L)

    # Time-delay aggregation: top-k delays -> weighted circular shifts,
    # expressed as one small (B, L, L) permutation matmul (MXU-friendly).
    top_k = max(1, int(factor * math.log(L)))
    weights, delay = jax.lax.top_k(mean_value, top_k)            # (B, top_k)
    tmp_corr = jax.nn.softmax(weights, axis=-1)                  # (B, top_k)

    rel = (jnp.arange(L)[None, :] - jnp.arange(L)[:, None]) % L  # (L, L)
    onehot = (rel[None, None, :, :] == delay[:, :, None, None])  # (B, k, L, L)
    perm = jnp.einsum('bk,bkij->bij',
                      tmp_corr, onehot.astype(tmp_corr.dtype))   # (B, L, L)
    delays_agg = jnp.einsum('bij,bhej->bhei',
                            perm.astype(v_t.dtype), v_t)         # (B, H, E, L)

    return jnp.transpose(delays_agg, (0, 3, 1, 2))               # (B, L, H, E)


# ----------------------------------------------------------------------------
# AutoCorrelationLayer parameters + forward
# ----------------------------------------------------------------------------
def init_params(key, d_model, n_heads, d_keys=None, d_values=None):
    d_keys = d_keys or d_model // n_heads
    d_values = d_values or d_model // n_heads
    dims = [
        ("q", d_model, d_keys * n_heads),
        ("k", d_model, d_keys * n_heads),
        ("v", d_model, d_values * n_heads),
        ("o", d_values * n_heads, d_model),
    ]
    params = {}
    for name, fan_in, fan_out in dims:
        key, kw, kb = jax.random.split(key, 3)
        bound = 1.0 / math.sqrt(fan_in)
        # stored as (in, out) so the kernel computes x @ W + b directly
        params["w" + name] = jax.random.uniform(
            kw, (fan_in, fan_out), jnp.float32, -bound, bound)
        params["b" + name] = jax.random.uniform(
            kb, (1, fan_out), jnp.float32, -bound, bound)
    return params


def prepare_params(params):
    """One-time prep (NOT per forward): cast weights to the MXU input dtype,
    pad out-features to a lane-aligned (128) multiple, keep biases f32, and
    build the fused QKV weight for the self-attention fast path."""
    def prep(w, b):
        n = w.shape[1]
        npad = _round_up(n, 128)
        wp = w.astype(_COMPUTE_DTYPE)
        bp = b.astype(jnp.float32)
        if npad != n:
            wp = jnp.pad(wp, ((0, 0), (0, npad - n)))
            bp = jnp.pad(bp, ((0, 0), (0, npad - n)))
        return wp, bp, n

    prepped = {}
    for name in ("q", "k", "v", "o"):
        prepped["w" + name], prepped["b" + name], prepped["n" + name] = prep(
            params["w" + name], params["b" + name])
    wqkv = jnp.concatenate([params["wq"], params["wk"], params["wv"]], axis=1)
    bqkv = jnp.concatenate([params["bq"], params["bk"], params["bv"]], axis=1)
    prepped["wqkv"], prepped["bqkv"], prepped["nqkv"] = prep(wqkv, bqkv)
    prepped["nq_split"] = params["wq"].shape[1]
    prepped["nk_split"] = params["wk"].shape[1]
    return prepped


def auto_correlation_layer(prepped, queries, keys, values, n_heads):
    B, L, d_model = queries.shape
    S = keys.shape[1]
    H = n_heads

    if queries is keys and keys is values:
        # Self-attention: fuse Q/K/V into one kernel launch (x read once).
        # (Fast path only triggers on object identity; perf-only, not correctness.)
        qkv = pallas_linear(queries.reshape(B * L, d_model),
                            prepped["wqkv"], prepped["bqkv"], prepped["nqkv"])
        nq, nk = prepped["nq_split"], prepped["nk_split"]
        q = qkv[:, :nq].reshape(B, L, H, -1)
        k = qkv[:, nq:nq + nk].reshape(B, S, H, -1)
        v = qkv[:, nq + nk:].reshape(B, S, H, -1)
    else:
        q = pallas_linear(queries.reshape(B * L, d_model),
                          prepped["wq"], prepped["bq"],
                          prepped["nq"]).reshape(B, L, H, -1)
        k = pallas_linear(keys.reshape(B * S, d_model),
                          prepped["wk"], prepped["bk"],
                          prepped["nk"]).reshape(B, S, H, -1)
        v = pallas_linear(values.reshape(B * S, d_model),
                          prepped["wv"], prepped["bv"],
                          prepped["nv"]).reshape(B, S, H, -1)

    out = auto_correlation(q, k, v)                              # (B, L, H, Dv)
    out = out.reshape(B * L, -1)
    out = pallas_linear(out, prepped["wo"], prepped["bo"],
                        prepped["no"]).reshape(B, L, d_model)
    return out


if __name__ == "__main__":
    B, L, S = 2, 8, 8
    d_model, n_heads = 32, 4

    key = jax.random.PRNGKey(0)
    key, kx, kq, kk, kv, kp = jax.random.split(key, 6)
    x = jax.random.normal(kx, (B, L, d_model), jnp.float32)
    queries = jax.random.normal(kq, (B, L, d_model), jnp.float32)
    keys = jax.random.normal(kk, (B, S, d_model), jnp.float32)
    values = jax.random.normal(kv, (B, S, d_model), jnp.float32)

    raw_params = init_params(kp, d_model, n_heads)
    params = prepare_params(raw_params)

    # Self-attention path (fused QKV projection) and cross path (3 projections).
    out_self = auto_correlation_layer(params, x, x, x, n_heads)
    out_cross = auto_correlation_layer(params, queries, keys, values, n_heads)
    out_self, out_cross = jax.block_until_ready((out_self, out_cross))
    assert out_self.shape == (B, L, d_model)
    assert out_cross.shape == (B, L, d_model)

    # Pure-JAX reference of the same forward pass at matched MXU precision
    # (bf16 inputs, f32 accumulation) so the check is robust on every TPU
    # generation and isolates the Pallas plumbing (tiling/residency/bias/pad).
    def ref_layer(p, q_in, k_in, v_in):
        def lin(x2d, name):
            w = p["w" + name].astype(_COMPUTE_DTYPE)
            b = p["b" + name].astype(jnp.float32)
            return jnp.dot(x2d.astype(_COMPUTE_DTYPE), w,
                           preferred_element_type=jnp.float32) + b
        Bq, Lq, _ = q_in.shape
        Sq = k_in.shape[1]
        q = lin(q_in.reshape(Bq * Lq, d_model), "q").reshape(Bq, Lq, n_heads, -1)
        k = lin(k_in.reshape(Bq * Sq, d_model), "k").reshape(Bq, Sq, n_heads, -1)
        v = lin(v_in.reshape(Bq * Sq, d_model), "v").reshape(Bq, Sq, n_heads, -1)
        o = auto_correlation(q, k, v).reshape(Bq * Lq, -1)
        return lin(o, "o").reshape(Bq, Lq, d_model)

    ref_cross = ref_layer(raw_params, queries, keys, values)
    ref_self = ref_layer(raw_params, x, x, x)
    assert jnp.allclose(out_cross, ref_cross, rtol=2e-2, atol=2e-2), \
        "Pallas forward (cross) does not match JAX reference"
    assert jnp.allclose(out_self, ref_self, rtol=2e-2, atol=2e-2), \
        "Pallas forward (self) does not match JAX reference"
    print("KERNEL_OK")
</pallas_src>

<mosaic_0001>
module attributes {stable_mosaic.version = 11 : i64} {
  func.func @_linear_kernel(%arg0: i32, %arg1: memref<8x32xf32, #tpu.memory_space<vmem>>, %arg2: memref<32x128xbf16, #tpu.memory_space<vmem>>, %arg3: memref<1x128xf32, #tpu.memory_space<vmem>>, %arg4: memref<8x128xf32, #tpu.memory_space<vmem>>) attributes {dimension_semantics = [#tpu.dimension_semantics<parallel>], iteration_bounds = array<i64: 2>, scalar_prefetch = 0 : i64, scratch_operands = 0 : i64, tpu.core_type = #tpu.core_type<tc>, window_params = [{transform_indices = @transform_0, window_bounds = array<i64: 8, 32>}, {pipeline_mode = #tpu.pipeline_mode<synchronous>, transform_indices = @transform_1, window_bounds = array<i64: 32, 128>}, {pipeline_mode = #tpu.pipeline_mode<synchronous>, transform_indices = @transform_2, window_bounds = array<i64: 1, 128>}, {transform_indices = @transform_3, window_bounds = array<i64: 8, 128>}]} {
    %c0 = arith.constant 0 : index
    %c0_0 = arith.constant 0 : index
    %0 = vector.load %arg1[%c0, %c0_0] : memref<8x32xf32, #tpu.memory_space<vmem>>, vector<8x32xf32>
    %1 = arith.truncf %0 : vector<8x32xf32> to vector<8x32xbf16>
    %c0_1 = arith.constant 0 : index
    %c0_2 = arith.constant 0 : index
    %2 = vector.load %arg2[%c0_1, %c0_2] : memref<32x128xbf16, #tpu.memory_space<vmem>>, vector<32x128xbf16>
    %cst = arith.constant dense<0.000000e+00> : vector<8x128xf32>
    %3 = tpu.matmul %1, %2, %cst {dimension_numbers = #tpu.dot_dimension_numbers<[1], [0], [0], [1], [0, 0, 1, 1], [], []>} : vector<8x32xbf16>, vector<32x128xbf16>, vector<8x128xf32> -> vector<8x128xf32>
    %c0_3 = arith.constant 0 : index
    %c0_4 = arith.constant 0 : index
    %4 = vector.load %arg3[%c0_3, %c0_4] : memref<1x128xf32, #tpu.memory_space<vmem>>, vector<1x128xf32>
    %5 = vector.broadcast %4 : vector<1x128xf32> to vector<8x128xf32>
    %6 = arith.addf %3, %5 : vector<8x128xf32>
    %c0_5 = arith.constant 0 : index
    %c0_6 = arith.constant 0 : index
    %7 = vector.load %arg4[%c0_5, %c0_6] : memref<8x128xf32, #tpu.memory_space<vmem>>, vector<8x128xf32>
    tpu.vector_store %arg4[%c0_5, %c0_6], %6 {strides = array<i32>} : memref<8x128xf32, #tpu.memory_space<vmem>>, vector<8x128xf32>,
    return
  }
  func.func @transform_0(%arg0: i32) -> (i32, i32) {
    %c0_i32 = arith.constant 0 : i32
    %c0_i32_0 = arith.constant 0 : i32
    return %arg0, %c0_i32 : i32, i32
  }
  func.func @transform_1(%arg0: i32) -> (i32, i32) {
    %c0_i32 = arith.constant 0 : i32
    %c0_i32_0 = arith.constant 0 : i32
    %c0_i32_1 = arith.constant 0 : i32
    return %c0_i32, %c0_i32_0 : i32, i32
  }
  func.func @transform_2(%arg0: i32) -> (i32, i32) {
    %c0_i32 = arith.constant 0 : i32
    %c0_i32_0 = arith.constant 0 : i32
    %c0_i32_1 = arith.constant 0 : i32
    return %c0_i32, %c0_i32_0 : i32, i32
  }
  func.func @transform_3(%arg0: i32) -> (i32, i32) {
    %c0_i32 = arith.constant 0 : i32
    %c0_i32_0 = arith.constant 0 : i32
    return %arg0, %c0_i32 : i32, i32
  }
}

module attributes {stable_mosaic.version = 11 : i64} {
  func.func @_linear_kernel(%arg0: i32, %arg1: memref<8x32xf32, #tpu.memory_space<vmem>>, %arg2: memref<32x128xbf16, #tpu.memory_space<vmem>>, %arg3: memref<1x128xf32, #tpu.memory_space<vmem>>, %arg4: memref<8x128xf32, #tpu.memory_space<vmem>>) attributes {dimension_semantics = [#tpu.dimension_semantics<parallel>], iteration_bounds = array<i64: 2>, scalar_prefetch = 0 : i64, scratch_operands = 0 : i64, tpu.core_type = #tpu.core_type<tc>, window_params = [{transform_indices = @transform_0, window_bounds = array<i64: 8, 32>}, {pipeline_mode = #tpu.pipeline_mode<synchronous>, transform_indices = @transform_1, window_bounds = array<i64: 32, 128>}, {pipeline_mode = #tpu.pipeline_mode<synchronous>, transform_indices = @transform_2, window_bounds = array<i64: 1, 128>}, {transform_indices = @transform_3, window_bounds = array<i64: 8, 128>}]} {
    %c0 = arith.constant 0 : index
    %c0_0 = arith.constant 0 : index
    %0 = vector.load %arg1[%c0, %c0_0] : memref<8x32xf32, #tpu.memory_space<vmem>>, vector<8x32xf32>
    %1 = arith.truncf %0 : vector<8x32xf32> to vector<8x32xbf16>
    %c0_1 = arith.constant 0 : index
    %c0_2 = arith.constant 0 : index
    %2 = vector.load %arg2[%c0_1, %c0_2] : memref<32x128xbf16, #tpu.memory_space<vmem>>, vector<32x128xbf16>
    %cst = arith.constant dense<0.000000e+00> : vector<8x128xf32>
    %3 = tpu.matmul %1, %2, %cst {dimension_numbers = #tpu.dot_dimension_numbers<[1], [0], [0], [1], [0, 0, 1, 1], [], []>} : vector<8x32xbf16>, vector<32x128xbf16>, vector<8x128xf32> -> vector<8x128xf32>
    %c0_3 = arith.constant 0 : index
    %c0_4 = arith.constant 0 : index
    %4 = vector.load %arg3[%c0_3, %c0_4] : memref<1x128xf32, #tpu.memory_space<vmem>>, vector<1x128xf32>
    %5 = vector.broadcast %4 : vector<1x128xf32> to vector<8x128xf32>
    %6 = arith.addf %3, %5 : vector<8x128xf32>
    %c0_5 = arith.constant 0 : index
    %c0_6 = arith.constant 0 : index
    %7 = vector.load %arg4[%c0_5, %c0_6] : memref<8x128xf32, #tpu.memory_space<vmem>>, vector<8x128xf32>
    tpu.vector_store %arg4[%c0_5, %c0_6], %6 {strides = array<i32>} : memref<8x128xf32, #tpu.memory_space<vmem>>, vector<8x128xf32>,
    return
  }
  func.func @transform_0(%arg0: i32) -> (i32, i32) {
    %c0_i32 = arith.constant 0 : i32
    %c0_i32_0 = arith.constant 0 : i32
    return %arg0, %c0_i32 : i32, i32
  }
  func.func @transform_1(%arg0: i32) -> (i32, i32) {
    %c0_i32 = arith.constant 0 : i32
    %c0_i32_0 = arith.constant 0 : i32
    %c0_i32_1 = arith.constant 0 : i32
    return %c0_i32, %c0_i32_0 : i32, i32
  }
  func.func @transform_2(%arg0: i32) -> (i32, i32) {
    %c0_i32 = arith.constant 0 : i32
    %c0_i32_0 = arith.constant 0 : i32
    %c0_i32_1 = arith.constant 0 : i32
    return %c0_i32, %c0_i32_0 : i32, i32
  }
  func.func @transform_3(%arg0: i32) -> (i32, i32) {
    %c0_i32 = arith.constant 0 : i32
    %c0_i32_0 = arith.constant 0 : i32
    return %arg0, %c0_i32 : i32, i32
  }
}

</mosaic_0001>

<bundles_post_ra>
// kernel: tpu_custom_call.1
= control target key start
LH: loop header
LB: loop body
LE: loop exit
PB: predicated region body
PF: predicated region fallthrough
CT: control target
= control target key end

     0   :  { %8 = vsyncpa [#allocation3], 0  ;;  %s778_s0 = inlined_call_operand.hbm [shape: f32[16,32], index: 0, kind: input, shape index: {}]   ;;  %s779_s1 = inlined_call_operand.hbm [shape: bf16[32,128], index: 1, kind: input, shape index: {}]   ;;  %s780_s2 = inlined_call_operand.vmem [shape: f32[1,128], index: 2, kind: input, shape index: {}]   ;;  %s781_s3 = inlined_call_operand.hbm [shape: f32[16,128], index: 3, kind: output, shape index: {}]  }
   0x1   :  { %10 = vsyncpa [#allocation3 + $0x1], 0 }
   0x2   :  { %11 = vsyncpa [#allocation6], 0 }
   0x3   :  { %12 = vsyncpa [#allocation4], 0 }
   0x4   :  { %14 = vsyncpa [#allocation4 + $0x1], 0  ;;  %s609_s12 = smov 0   ;;  %s611_s13 = smov 0  }
   0x5   :  { %s613_s14 = smov 0   ;;  %s615_s15 = smov 0  }
   0x6 LB: > { %s630_s16 = sadd.s32 4294967295, %s580_s15   ;;  %s366_s17 = sadd.s32 4294967294, %s580_s15   ;;  %s580_s15 = sphi %s615_s15, %s803_s15   ;;  %s576_s14 = sphi %s613_s14, %s802_s14   ;;  %s572_s13 = sphi %s611_s13, %s801_s13   ;;  %s568_s12 = sphi %s609_s12, %s800_s12  }
   0x7   : > { %p40_p0 = scmp.ne.s32.totalorder %s572_s13, %s568_s12  ;;  %p782_p1 = scmp.eq.s32.totalorder %s630_s16, 0 }
   0x8   : > { %p112_p3 = scmp.eq.s32.totalorder %s366_s17, 1  ;;  %p367_p5 = scmp.ge.s32.totalorder %s580_s15, 1 }
   0x9   : > { %p639_p4 = por %p782_p1, %p40_p0  ;;  %p119_p7 = scmp.lt.s32.totalorder %s580_s15, 3 }
   0xa   : > { %p644_p6 = por %p112_p3, %p40_p0  ;;  %s582_s21 = smov [#allocation5]  }
   0xb   : > { %s786_s18 = scalar_select %p639_p4, 1, 0 }
   0xc   : > { %s787_s19 = scalar_select %p644_p6, 1, 0 }
   0xd   : > { %p649_p8 = pnand %p367_p5, %p119_p7  ;;  %s131_s22 = sshll.u32 %s582_s21, 4  ;;  %s132_s22 = int_to_ptr.vmem [resolvable:$true] %s131_s22 }
   0xe   : > { %s663_s24 = sadd.s32 1, %s580_s15   ;;  %s27_s25 = sadd.s32 1, %s576_s14 }
   0xf   : > { %s788_s20 = scalar_select %p649_p8, 1, 0 }
  0x10   : > { %p403_p9 = pneg %p649_p8  ;;  %s24_s26 = ssub.s32 %s580_s15, %s663_s24 }
  0x11   : > { %s469_s27 = scalar_lea.vmem %s132_s22, 256  ;;  %p477_p5 = scmp.lt.s32.totalorder %s132_s22, %s132_s22 }
  0x12   : > { %p658_p11 = pnand %p403_p9, %p782_p1  ;;  %p470_p13 = scmp.ne.s32.totalorder %s132_s22, %s469_s27 }
  0x13   : > { %p478_p7 = scmp.lt.s32.totalorder %s469_s27, %s469_s27 }
  0x14   : > { %p460_p12 = pneg %p658_p11 }
  0x15   : > { %p479_p10 = por %p478_p7, %p477_p5 }
  0x16   : > { %p472_p0 = pnand %p470_p13, %p460_p12 }
  0x18   : > { %p473_p3 = pneg %p472_p0 }
  0x1a   : > { %p480_p2 = pnand %p479_p10, %p473_p3 }
  0x1c   : > { %483 = shalt.err (!%p480_p2)
}
  0x1d   : > { %s583_s28 = smov 64   ;;  %s584_s29 = smov 4  }
  0x1e   : > { %406 = dma.hbm_to_vmem [thread:$0]  (!%p658_p11), %s779_s1, 256, %s132_s22, [#allocation6], %s583_s28, %s583_s28, %s584_s29  }
  0x1f   : > { %p25_p9 = scmp.eq.s32.totalorder %s24_s26, 0  ;;  %p34_p12 = scmp.ne.s32.totalorder %s576_s14, %s572_s13 }
  0x20   : > { %p35_p10 = scmp.eq.s32.totalorder %s580_s15, 0  ;;  %p416_p2 = scmp.lt.s32.totalorder %s580_s15, 2 }
  0x21   : > { %s680_s5 = scalar_select %p25_p9, %s576_s14, %s27_s25  }
  0x22   : > { %p36_p13 = por %p35_p10, %p34_p12  ;;  %p790_p0 = scmp.eq.s32.totalorder %s630_s16, 1 }
  0x23   : > { %s148_s7 = sand.u32 1, %s576_s14   ;;  %s371_s8 = sshll.u32 %s580_s15, 7 }
  0x24   : > { %p684_p3 = por %p790_p0, %p34_p12  ;;  %s370_s9 = sshll.u32 %s148_s7, 3 }
  0x25   : > { %s693_s17 = scalar_lea.hbm %s778_s0, %s371_s8  ;;  %s152_s21 = scalar_lea.vmem [#allocation2], %s370_s9 }
  0x26   : > { %s791_s6 = scalar_select %p684_p3, 1, 0 }
  0x27   : > { %s159_s22 = sshll.u32 %s152_s21, 4  ;;  %p695_p11 = pnand %p416_p2, %p36_p13  ;;  %s160_s22 = int_to_ptr.vmem [resolvable:$true] %s159_s22 }
  0x28   : > { %s149_s25 = scalar_lea.sflag [#allocation3], %s148_s7  ;;  %s484_s26 = scalar_lea.hbm %s693_s17, 128 }
  0x29   : > { %p485_p5 = scmp.ne.s32.totalorder %s693_s17, %s484_s26  ;;  %p486_p7 = pneg %p695_p11 }
  0x2a   : > { %s489_s29 = scalar_lea.hbm %s778_s0, 256  ;;  %p490_p10 = scmp.lt.s32.totalorder %s693_s17, %s778_s0 }
  0x2b   : > { %p487_p9 = pnand %p486_p7, %p485_p5  ;;  %p491_p2 = scmp.lt.s32.totalorder %s489_s29, %s484_s26 }
  0x2d   : > { %p488_p12 = pneg %p487_p9  ;;  %p492_p13 = por %p491_p2, %p490_p10 }
  0x2f   : > { %p493_p0 = pnand %p492_p13, %p488_p12 }
  0x31   : > { %496 = shalt.err (!%p493_p0)
}
  0x32   : > { %s497_s8 = scalar_lea.vmem %s160_s22, 128  ;;  %s585_s7 = smov [#allocation2]  }
  0x33   : > { %p498_p1 = scmp.ne.s32.totalorder %s160_s22, %s497_s8  ;;  %s502_s9 = sshll.u32 %s585_s7, 4  ;;  %s503_s9 = int_to_ptr.vmem [resolvable:$false] %s502_s9 }
  0x34   : > { %s504_s10 = scalar_lea.vmem %s503_s9, 256  ;;  %p505_p5 = scmp.lt.s32.totalorder %s160_s22, %s503_s9 }
  0x35   : > { %p500_p6 = pnand %p498_p1, %p486_p7  ;;  %p506_p9 = scmp.lt.s32.totalorder %s504_s10, %s497_s8 }
  0x37   : > { %p501_p3 = pneg %p500_p6  ;;  %p507_p4 = por %p506_p9, %p505_p5 }
  0x39   : > { %p508_p8 = pnand %p507_p4, %p501_p3 }
  0x3b   : > { %511 = shalt.err (!%p508_p8)
}
  0x3c   : > { %410 = dma.hbm_to_vmem [thread:$0]  (!%p695_p11), %s693_s17, 128, %s160_s22, %s149_s25  }
  0x3d   : > { %p793_p12 = scmp.ne.s32.totalorder %s788_s20, 0 }
  0x3e   : > { %s716_s11 = sand.u32 (!%p793_p12), 1, %s572_s13   ;;  %p794_p1 = scmp.ne.s32.totalorder (!%p793_p12), %s786_s18, 0 }
  0x3f   : > { %168 = sbr.rel (%p793_p12) target bundleno = 290 (0x122), region = 32  ;;  %s373_s21 = sshll.u32 (!%p793_p12), %s716_s11, 3 }
  0x40   : > { %s171_s26 = scalar_lea.sflag (!%p793_p12), [#allocation3], %s716_s11  ;;  %s174_s27 = scalar_lea.vmem (!%p793_p12), [#allocation2], %s373_s21 }
  0x44   : > { %555 = dma.done.wait (%p794_p1), %s171_s26, 128  }
  0x45   : > { %557 = vsyncadd (%p794_p1), %s171_s26, 4294967168  ;;  %p795_p4 = scmp.eq.s32.totalorder %s630_s16, 0 }
  0x47   : > { %559 = dma.done.wait (%p795_p4), [#allocation6], 256   ;;  %p796_p6 = pmov %p795_p4 }
  0x48   : > { %v586_v0 = vmov 0.0   ;;  %vm587_vm0 = vmmov 0   ;;  %v456_v1 = vld [vmem:[#allocation5 + $0x8] sm:$0xff]   ;;  %v457_v2 = vld [vmem:[#allocation5] sm:$0xff]   ;;  %v202_v3 = vld [vmem:[%s174_s27] sm:$0xff]  ;;  %vm227_vm1 = vcmask 261120  }
  0x49   : > { %561 = vsyncadd (%p796_p6), [#allocation6], 4294967040  ;;  %387 = vmatprep.subr.bf16.mxu0 %v586_v0  ;;  %391 = vmatprep.mubr.msk.bf16.mxu0 %vm587_vm0, %v586_v0  ;;  %v203_v4 = vpack.c.bf16 %v202_v3, %v202_v3  ;;  %v376_v5 = vld [vmem:[%s780_s2] ss:$0 sm:$0xff]  ;;  %s381_s17 = sshll.u32 %s630_s16, 7  ;;  %s200_s22 = scalar_lea.vmem [#allocation7], %s373_s21 }
  0x4a   : > { %388 = vmatpush3.bf16.msra.mxu0 %v456_v1  ;;  %s286_s23 = sshll.u32 %s200_s22, 4  ;;  %s735_s29 = scalar_lea.hbm %s781_s3, %s381_s17  ;;  %s737_s23 = int_to_ptr.vmem [resolvable:$true] %s286_s23 }
  0x4b   : > { %389 = vmatprep.subr.bf16.mxu0 %v586_v0  ;;  %s273_s30 = scalar_lea.sflag [#allocation4], %s716_s11  ;;  %s512_s4 = scalar_lea.vmem %s737_s23, 128 }
  0x4c   : > { %p513_p8 = scmp.ne.s32.totalorder %s737_s23, %s512_s4  ;;  %p797_p3 = scmp.ne.s32.totalorder %s791_s6, 0 }
  0x4d   : > { %s588_s16 = smov [#allocation7]  }
  0x4e   : > { %390 = vmatpush3.bf16.msra.mxu0 %v457_v2  ;;  %p514_p11 = pnand %p513_p8, %p797_p3  ;;  %s516_s8 = sshll.u32 %s588_s16, 4  ;;  %s517_s8 = int_to_ptr.vmem [resolvable:$false] %s516_s8 }
  0x4f   : > { %s518_s7 = scalar_lea.vmem %s517_s8, 256  ;;  %p519_p10 = scmp.lt.s32.totalorder %s737_s23, %s517_s8 }
  0x50   : > { %p515_p7 = pneg %p514_p11  ;;  %p520_p2 = scmp.lt.s32.totalorder %s518_s7, %s512_s4 }
  0x51   : > { %392 = vmatmul.mubr.msk.bf16.vlgmr.msra.gmra.mxu0 %vm227_vm1, %v203_v4 }
  0x52   : > { %p521_p13 = por %p520_p2, %p519_p10 }
  0x54   : > { %p522_p0 = pnand %p521_p13, %p515_p7 }
 0x111   : > { %v265_v6 = vpop.f32.mrf.mxu0 }
 0x112   : > { %v266_v7 = vadd.f32 %v376_v5, %v265_v6 }
 0x113   : > { %v393_v8 = vpop.f32.mrf.mxu0 }
 0x114   : > { %271 = vst [vmem:[%s200_s22] sm:$0xff] %v266_v7 }
 0x115   : > { %v268_v9 = vpop.f32.mrf.mxu0 }
 0x116   : > { %525 = shalt.err (!%p522_p0)
}
 0x117   : > { %s526_s9 = scalar_lea.hbm %s735_s29, 128  ;;  %s530_s21 = scalar_lea.hbm %s781_s3, 256 }
 0x118   : > { %p527_p5 = scmp.ne.s32.totalorder %s735_s29, %s526_s9  ;;  %p531_p1 = scmp.lt.s32.totalorder %s735_s29, %s781_s3 }
 0x119   : > { %p532_p4 = scmp.lt.s32.totalorder %s530_s21, %s526_s9 }
 0x11a   : > { %p528_p9 = pnand %p527_p5, %p797_p3 }
 0x11b   : > { %p533_p6 = por %p532_p4, %p531_p1 }
 0x11c   : > { %p529_p12 = pneg %p528_p9 }
 0x11e   : > { %p534_p8 = pnand %p533_p6, %p529_p12 }
 0x120   : > { %537 = shalt.err (!%p534_p8)
}
 0x121   : > { %401 = dma.vmem_to_hbm [thread:$0]  (%p797_p3), %s737_s23, 128, %s735_s29, %s273_s30   ;;  %v394_v10 = vpop.f32.mrf.mxu0 }
 0x122 PF: > { %s298_s18 = sand.u32 1, %s568_s12   ;;  %p798_p11 = scmp.ne.s32.totalorder %s787_s19, 0 }
 0x123   : > { %p799_p7 = scmp.ge.s32.totalorder %s580_s15, 2  ;;  %s299_s20 = scalar_lea.sflag [#allocation4], %s298_s18 }
 0x125   : > { %p412_p10 = pnand %p799_p7, %p798_p11 }
 0x127   : > { %p413_p2 = pneg %p412_p10 }
 0x129   : > { %563 = dma.done.wait (%p413_p2), %s299_s20, 128  }
 0x12a   : > { %565 = vsyncadd (%p413_p2), %s299_s20, 4294967168  ;;  %p17_p13 = scmp.ge.s32.totalorder %s663_s24, 4   ;;  %s800_s12 = smov %s572_s13 }
 0x12b   : > { %s801_s13 = smov %s576_s14  ;;  %s802_s14 = smov %s680_s5 }
 0x12c   : > { %s803_s15 = smov %s663_s24  ;;  %19 = sbr.rel (!%p17_p13) target bundleno = 6 (0x6), region = 81 }
 0x131   :  { %304 = vsyncpa [#allocation3], 1 }
 0x132   :  { %306 = vsyncpa [#allocation3 + $0x1], 1 }
 0x133   :  { %307 = vsyncpa [#allocation6], 1 }
 0x134   :  { %308 = vsyncpa [#allocation4], 1 }
 0x135   :  { %310 = vsyncpa [#allocation4 + $0x1], 1 }

// kernel: tpu_custom_call.1
= control target key start
LH: loop header
LB: loop body
LE: loop exit
PB: predicated region body
PF: predicated region fallthrough
CT: control target
= control target key end

     0   :  { %8 = vsyncpa [#allocation3], 0  ;;  %s778_s0 = inlined_call_operand.hbm [shape: f32[16,32], index: 0, kind: input, shape index: {}]   ;;  %s779_s1 = inlined_call_operand.hbm [shape: bf16[32,128], index: 1, kind: input, shape index: {}]   ;;  %s780_s2 = inlined_call_operand.vmem [shape: f32[1,128], index: 2, kind: input, shape index: {}]   ;;  %s781_s3 = inlined_call_operand.hbm [shape: f32[16,128], index: 3, kind: output, shape index: {}]  }
   0x1   :  { %10 = vsyncpa [#allocation3 + $0x1], 0 }
   0x2   :  { %11 = vsyncpa [#allocation6], 0 }
   0x3   :  { %12 = vsyncpa [#allocation4], 0 }
   0x4   :  { %14 = vsyncpa [#allocation4 + $0x1], 0  ;;  %s609_s12 = smov 0   ;;  %s611_s13 = smov 0  }
   0x5   :  { %s613_s14 = smov 0   ;;  %s615_s15 = smov 0  }
   0x6 LB: > { %s630_s16 = sadd.s32 4294967295, %s580_s15   ;;  %s366_s17 = sadd.s32 4294967294, %s580_s15   ;;  %s580_s15 = sphi %s615_s15, %s803_s15   ;;  %s576_s14 = sphi %s613_s14, %s802_s14   ;;  %s572_s13 = sphi %s611_s13, %s801_s13   ;;  %s568_s12 = sphi %s609_s12, %s800_s12  }
   0x7   : > { %p40_p0 = scmp.ne.s32.totalorder %s572_s13, %s568_s12  ;;  %p782_p1 = scmp.eq.s32.totalorder %s630_s16, 0 }
   0x8   : > { %p112_p3 = scmp.eq.s32.totalorder %s366_s17, 1  ;;  %p367_p5 = scmp.ge.s32.totalorder %s580_s15, 1 }
   0x9   : > { %p639_p4 = por %p782_p1, %p40_p0  ;;  %p119_p7 = scmp.lt.s32.totalorder %s580_s15, 3 }
   0xa   : > { %p644_p6 = por %p112_p3, %p40_p0  ;;  %s582_s21 = smov [#allocation5]  }
   0xb   : > { %s786_s18 = scalar_select %p639_p4, 1, 0 }
   0xc   : > { %s787_s19 = scalar_select %p644_p6, 1, 0 }
   0xd   : > { %p649_p8 = pnand %p367_p5, %p119_p7  ;;  %s131_s22 = sshll.u32 %s582_s21, 4  ;;  %s132_s22 = int_to_ptr.vmem [resolvable:$true] %s131_s22 }
   0xe   : > { %s663_s24 = sadd.s32 1, %s580_s15   ;;  %s27_s25 = sadd.s32 1, %s576_s14 }
   0xf   : > { %s788_s20 = scalar_select %p649_p8, 1, 0 }
  0x10   : > { %p403_p9 = pneg %p649_p8  ;;  %s24_s26 = ssub.s32 %s580_s15, %s663_s24 }
  0x11   : > { %s469_s27 = scalar_lea.vmem %s132_s22, 256  ;;  %p477_p5 = scmp.lt.s32.totalorder %s132_s22, %s132_s22 }
  0x12   : > { %p658_p11 = pnand %p403_p9, %p782_p1  ;;  %p470_p13 = scmp.ne.s32.totalorder %s132_s22, %s469_s27 }
  0x13   : > { %p478_p7 = scmp.lt.s32.totalorder %s469_s27, %s469_s27 }
  0x14   : > { %p460_p12 = pneg %p658_p11 }
  0x15   : > { %p479_p10 = por %p478_p7, %p477_p5 }
  0x16   : > { %p472_p0 = pnand %p470_p13, %p460_p12 }
  0x18   : > { %p473_p3 = pneg %p472_p0 }
  0x1a   : > { %p480_p2 = pnand %p479_p10, %p473_p3 }
  0x1c   : > { %483 = shalt.err (!%p480_p2)
}
  0x1d   : > { %s583_s28 = smov 64   ;;  %s584_s29 = smov 4  }
  0x1e   : > { %406 = dma.hbm_to_vmem [thread:$0]  (!%p658_p11), %s779_s1, 256, %s132_s22, [#allocation6], %s583_s28, %s583_s28, %s584_s29  }
  0x1f   : > { %p25_p9 = scmp.eq.s32.totalorder %s24_s26, 0  ;;  %p34_p12 = scmp.ne.s32.totalorder %s576_s14, %s572_s13 }
  0x20   : > { %p35_p10 = scmp.eq.s32.totalorder %s580_s15, 0  ;;  %p416_p2 = scmp.lt.s32.totalorder %s580_s15, 2 }
  0x21   : > { %s680_s5 = scalar_select %p25_p9, %s576_s14, %s27_s25  }
  0x22   : > { %p36_p13 = por %p35_p10, %p34_p12  ;;  %p790_p0 = scmp.eq.s32.totalorder %s630_s16, 1 }
  0x23   : > { %s148_s7 = sand.u32 1, %s576_s14   ;;  %s371_s8 = sshll.u32 %s580_s15, 7 }
  0x24   : > { %p684_p3 = por %p790_p0, %p34_p12  ;;  %s370_s9 = sshll.u32 %s148_s7, 3 }
  0x25   : > { %s693_s17 = scalar_lea.hbm %s778_s0, %s371_s8  ;;  %s152_s21 = scalar_lea.vmem [#allocation2], %s370_s9 }
  0x26   : > { %s791_s6 = scalar_select %p684_p3, 1, 0 }
  0x27   : > { %s159_s22 = sshll.u32 %s152_s21, 4  ;;  %p695_p11 = pnand %p416_p2, %p36_p13  ;;  %s160_s22 = int_to_ptr.vmem [resolvable:$true] %s159_s22 }
  0x28   : > { %s149_s25 = scalar_lea.sflag [#allocation3], %s148_s7  ;;  %s484_s26 = scalar_lea.hbm %s693_s17, 128 }
  0x29   : > { %p485_p5 = scmp.ne.s32.totalorder %s693_s17, %s484_s26  ;;  %p486_p7 = pneg %p695_p11 }
  0x2a   : > { %s489_s29 = scalar_lea.hbm %s778_s0, 256  ;;  %p490_p10 = scmp.lt.s32.totalorder %s693_s17, %s778_s0 }
  0x2b   : > { %p487_p9 = pnand %p486_p7, %p485_p5  ;;  %p491_p2 = scmp.lt.s32.totalorder %s489_s29, %s484_s26 }
  0x2d   : > { %p488_p12 = pneg %p487_p9  ;;  %p492_p13 = por %p491_p2, %p490_p10 }
  0x2f   : > { %p493_p0 = pnand %p492_p13, %p488_p12 }
  0x31   : > { %496 = shalt.err (!%p493_p0)
}
  0x32   : > { %s497_s8 = scalar_lea.vmem %s160_s22, 128  ;;  %s585_s7 = smov [#allocation2]  }
  0x33   : > { %p498_p1 = scmp.ne.s32.totalorder %s160_s22, %s497_s8  ;;  %s502_s9 = sshll.u32 %s585_s7, 4  ;;  %s503_s9 = int_to_ptr.vmem [resolvable:$false] %s502_s9 }
  0x34   : > { %s504_s10 = scalar_lea.vmem %s503_s9, 256  ;;  %p505_p5 = scmp.lt.s32.totalorder %s160_s22, %s503_s9 }
  0x35   : > { %p500_p6 = pnand %p498_p1, %p486_p7  ;;  %p506_p9 = scmp.lt.s32.totalorder %s504_s10, %s497_s8 }
  0x37   : > { %p501_p3 = pneg %p500_p6  ;;  %p507_p4 = por %p506_p9, %p505_p5 }
  0x39   : > { %p508_p8 = pnand %p507_p4, %p501_p3 }
  0x3b   : > { %511 = shalt.err (!%p508_p8)
}
  0x3c   : > { %410 = dma.hbm_to_vmem [thread:$0]  (!%p695_p11), %s693_s17, 128, %s160_s22, %s149_s25  }
  0x3d   : > { %p793_p12 = scmp.ne.s32.totalorder %s788_s20, 0 }
  0x3e   : > { %s716_s11 = sand.u32 (!%p793_p12), 1, %s572_s13   ;;  %p794_p1 = scmp.ne.s32.totalorder (!%p793_p12), %s786_s18, 0 }
  0x3f   : > { %168 = sbr.rel (%p793_p12) target bundleno = 290 (0x122), region = 32  ;;  %s373_s21 = sshll.u32 (!%p793_p12), %s716_s11, 3 }
  0x40   : > { %s171_s26 = scalar_lea.sflag (!%p793_p12), [#allocation3], %s716_s11  ;;  %s174_s27 = scalar_lea.vmem (!%p793_p12), [#allocation2], %s373_s21 }
  0x44   : > { %555 = dma.done.wait (%p794_p1), %s171_s26, 128  }
  0x45   : > { %557 = vsyncadd (%p794_p1), %s171_s26, 4294967168  ;;  %p795_p4 = scmp.eq.s32.totalorder %s630_s16, 0 }
  0x47   : > { %559 = dma.done.wait (%p795_p4), [#allocation6], 256   ;;  %p796_p6 = pmov %p795_p4 }
  0x48   : > { %v586_v0 = vmov 0.0   ;;  %vm587_vm0 = vmmov 0   ;;  %v456_v1 = vld [vmem:[#allocation5 + $0x8] sm:$0xff]   ;;  %v457_v2 = vld [vmem:[#allocation5] sm:$0xff]   ;;  %v202_v3 = vld [vmem:[%s174_s27] sm:$0xff]  ;;  %vm227_vm1 = vcmask 261120  }
  0x49   : > { %561 = vsyncadd (%p796_p6), [#allocation6], 4294967040  ;;  %387 = vmatprep.subr.bf16.mxu0 %v586_v0  ;;  %391 = vmatprep.mubr.msk.bf16.mxu0 %vm587_vm0, %v586_v0  ;;  %v203_v4 = vpack.c.bf16 %v202_v3, %v202_v3  ;;  %v376_v5 = vld [vmem:[%s780_s2] ss:$0 sm:$0xff]  ;;  %s381_s17 = sshll.u32 %s630_s16, 7  ;;  %s200_s22 = scalar_lea.vmem [#allocation7], %s373_s21 }
  0x4a   : > { %388 = vmatpush3.bf16.msra.mxu0 %v456_v1  ;;  %s286_s23 = sshll.u32 %s200_s22, 4  ;;  %s735_s29 = scalar_lea.hbm %s781_s3, %s381_s17  ;;  %s737_s23 = int_to_ptr.vmem [resolvable:$true] %s286_s23 }
  0x4b   : > { %389 = vmatprep.subr.bf16.mxu0 %v586_v0  ;;  %s273_s30 = scalar_lea.sflag [#allocation4], %s716_s11  ;;  %s512_s4 = scalar_lea.vmem %s737_s23, 128 }
  0x4c   : > { %p513_p8 = scmp.ne.s32.totalorder %s737_s23, %s512_s4  ;;  %p797_p3 = scmp.ne.s32.totalorder %s791_s6, 0 }
  0x4d   : > { %s588_s16 = smov [#allocation7]  }
  0x4e   : > { %390 = vmatpush3.bf16.msra.mxu0 %v457_v2  ;;  %p514_p11 = pnand %p513_p8, %p797_p3  ;;  %s516_s8 = sshll.u32 %s588_s16, 4  ;;  %s517_s8 = int_to_ptr.vmem [resolvable:$false] %s516_s8 }
  0x4f   : > { %s518_s7 = scalar_lea.vmem %s517_s8, 256  ;;  %p519_p10 = scmp.lt.s32.totalorder %s737_s23, %s517_s8 }
  0x50   : > { %p515_p7 = pneg %p514_p11  ;;  %p520_p2 = scmp.lt.s32.totalorder %s518_s7, %s512_s4 }
  0x51   : > { %392 = vmatmul.mubr.msk.bf16.vlgmr.msra.gmra.mxu0 %vm227_vm1, %v203_v4 }
  0x52   : > { %p521_p13 = por %p520_p2, %p519_p10 }
  0x54   : > { %p522_p0 = pnand %p521_p13, %p515_p7 }
 0x111   : > { %v265_v6 = vpop.f32.mrf.mxu0 }
 0x112   : > { %v266_v7 = vadd.f32 %v376_v5, %v265_v6 }
 0x113   : > { %v393_v8 = vpop.f32.mrf.mxu0 }
 0x114   : > { %271 = vst [vmem:[%s200_s22] sm:$0xff] %v266_v7 }
 0x115   : > { %v268_v9 = vpop.f32.mrf.mxu0 }
 0x116   : > { %525 = shalt.err (!%p522_p0)
}
 0x117   : > { %s526_s9 = scalar_lea.hbm %s735_s29, 128  ;;  %s530_s21 = scalar_lea.hbm %s781_s3, 256 }
 0x118   : > { %p527_p5 = scmp.ne.s32.totalorder %s735_s29, %s526_s9  ;;  %p531_p1 = scmp.lt.s32.totalorder %s735_s29, %s781_s3 }
 0x119   : > { %p532_p4 = scmp.lt.s32.totalorder %s530_s21, %s526_s9 }
 0x11a   : > { %p528_p9 = pnand %p527_p5, %p797_p3 }
 0x11b   : > { %p533_p6 = por %p532_p4, %p531_p1 }
 0x11c   : > { %p529_p12 = pneg %p528_p9 }
 0x11e   : > { %p534_p8 = pnand %p533_p6, %p529_p12 }
 0x120   : > { %537 = shalt.err (!%p534_p8)
}
 0x121   : > { %401 = dma.vmem_to_hbm [thread:$0]  (%p797_p3), %s737_s23, 128, %s735_s29, %s273_s30   ;;  %v394_v10 = vpop.f32.mrf.mxu0 }
 0x122 PF: > { %s298_s18 = sand.u32 1, %s568_s12   ;;  %p798_p11 = scmp.ne.s32.totalorder %s787_s19, 0 }
 0x123   : > { %p799_p7 = scmp.ge.s32.totalorder %s580_s15, 2  ;;  %s299_s20 = scalar_lea.sflag [#allocation4], %s298_s18 }
 0x125   : > { %p412_p10 = pnand %p799_p7, %p798_p11 }
 0x127   : > { %p413_p2 = pneg %p412_p10 }
 0x129   : > { %563 = dma.done.wait (%p413_p2), %s299_s20, 128  }
 0x12a   : > { %565 = vsyncadd (%p413_p2), %s299_s20, 4294967168  ;;  %p17_p13 = scmp.ge.s32.totalorder %s663_s24, 4   ;;  %s800_s12 = smov %s572_s13 }
 0x12b   : > { %s801_s13 = smov %s576_s14  ;;  %s802_s14 = smov %s680_s5 }
 0x12c   : > { %s803_s15 = smov %s663_s24  ;;  %19 = sbr.rel (!%p17_p13) target bundleno = 6 (0x6), region = 81 }
 0x131   :  { %304 = vsyncpa [#allocation3], 1 }
 0x132   :  { %306 = vsyncpa [#allocation3 + $0x1], 1 }
 0x133   :  { %307 = vsyncpa [#allocation6], 1 }
 0x134   :  { %308 = vsyncpa [#allocation4], 1 }
 0x135   :  { %310 = vsyncpa [#allocation4 + $0x1], 1 }

</bundles_post_ra>
